<compile_context>
chip_gen: v7x
topology: tpu7x:2x2x1
jax: 0.10.0
libtpu: 0.0.40
codegen_flags: <defaults>
</compile_context>

<pallas_src>
import jax
import jax.numpy as jnp
from jax.experimental import pallas as pl
from jax.experimental.pallas import tpu as pltpu

BN_EPS = 1e-5
LANE = 128


def _round_up(n, m=LANE):
    return ((n + m - 1) // m) * m


def _pad_to(a, shape):
    return jnp.pad(a, [(0, t - s) for s, t in zip(a.shape, shape)])


def mlp_head_kernel(x_ref, w1_ref, bn_ref, w2_ref, b2_ref, o_ref):
    # x_ref:  (B, Cin_pad) f32        w1_ref: (Cin_pad, H_pad) bf16
    # bn_ref: (2, H_pad)  f32 [gamma; beta]
    # w2_ref: (H_pad, P_pad) bf16     b2_ref: (1, P_pad) f32
    x = x_ref[...]

    # Linear 1 (bias omitted: it cancels under training-mode BN mean subtraction).
    h = jnp.dot(x.astype(jnp.bfloat16), w1_ref[...],
                preferred_element_type=jnp.float32)            # (B, H_pad) f32

    # BatchNorm1d, training-mode batch stats, single reduction pass.
    inv_b = 1.0 / h.shape[0]
    s1 = jnp.sum(h, axis=0, keepdims=True)
    s2 = jnp.sum(h * h, axis=0, keepdims=True)
    mean = s1 * inv_b
    var = jnp.maximum(s2 * inv_b - mean * mean, 0.0)           # biased variance
    bn = bn_ref[...]
    scale = bn[0:1, :] * jax.lax.rsqrt(var + BN_EPS)           # gamma / sqrt(var+eps)
    shift = bn[1:2, :] - mean * scale                          # beta - mean*scale

    # Fused BN affine + ReLU.
    h = jnp.maximum(h * scale + shift, 0.0)

    # Linear 2.
    out = jnp.dot(h.astype(jnp.bfloat16), w2_ref[...],
                  preferred_element_type=jnp.float32) + b2_ref[...]
    o_ref[...] = out.astype(o_ref.dtype)


def mlp_head_batched(xg, w1p, bn, w2p, b2p, projection_size):
    """xg: (G, B, in_channels).  Each group is an independent BatchNorm batch."""
    G, B, _ = xg.shape
    in_p, hid_p = w1p.shape
    proj_p = w2p.shape[1]
    x_pad = _pad_to(xg, (G, B, in_p))        # zero-pad feature lanes to 128*k

    out = pl.pallas_call(
        mlp_head_kernel,
        out_shape=jax.ShapeDtypeStruct((G, B, proj_p), jnp.float32),
        grid=(G,),
        in_specs=[
            pl.BlockSpec((None, B, in_p), lambda g: (g, 0, 0)),
            pl.BlockSpec((in_p, hid_p), lambda g: (0, 0)),      # weights stay VMEM-resident
            pl.BlockSpec((2, hid_p), lambda g: (0, 0)),
            pl.BlockSpec((hid_p, proj_p), lambda g: (0, 0)),
            pl.BlockSpec((1, proj_p), lambda g: (0, 0)),
        ],
        out_specs=pl.BlockSpec((None, B, proj_p), lambda g: (g, 0, 0),
                               memory_space=pltpu.MemorySpace.VMEM),
        compiler_params=pltpu.CompilerParams(
            dimension_semantics=("parallel",)),   # groups independent (BN per group)
    )(x_pad, w1p, bn, w2p, b2p)
    return out[:, :, :projection_size]


def mlp_head(x, w1p, bn, w2p, b2p, projection_size):
    """Module-equivalent entry point: x is (B, in_channels)."""
    return mlp_head_batched(x[None], w1p, bn, w2p, b2p, projection_size)[0]


def init_params(key, in_channels, mlp_hidden_size, projection_size):
    """PyTorch-like uniform fan-in init, natural module shapes, f32."""
    k1, k2, k3, k4 = jax.random.split(key, 4)
    bound1 = 1.0 / jnp.sqrt(in_channels)
    bound2 = 1.0 / jnp.sqrt(mlp_hidden_size)
    # stored as (in, out) so the kernel computes x @ W
    w1 = jax.random.uniform(k1, (in_channels, mlp_hidden_size), jnp.float32, -bound1, bound1)
    b1 = jax.random.uniform(k2, (1, mlp_hidden_size), jnp.float32, -bound1, bound1)
    gamma = jnp.ones((1, mlp_hidden_size), jnp.float32)
    beta = jnp.zeros((1, mlp_hidden_size), jnp.float32)
    w2 = jax.random.uniform(k3, (mlp_hidden_size, projection_size), jnp.float32, -bound2, bound2)
    b2 = jax.random.uniform(k4, (1, projection_size), jnp.float32, -bound2, bound2)
    return w1, b1, gamma, beta, w2, b2


def pack_params(w1, b1, gamma, beta, w2, b2):
    """Pad lane dims to multiples of 128, cast MXU weights to bf16, pack gamma/beta.

    b1 is intentionally dropped: under training-mode BatchNorm the Linear-1 bias
    is removed with the batch mean and cannot affect the output.
    """
    del b1
    in_c, hid = w1.shape
    proj = w2.shape[1]
    in_p, hid_p, proj_p = _round_up(in_c), _round_up(hid), _round_up(proj)
    w1p = _pad_to(w1, (in_p, hid_p)).astype(jnp.bfloat16)
    bn = jnp.concatenate([_pad_to(gamma, (1, hid_p)), _pad_to(beta, (1, hid_p))], axis=0)
    w2p = _pad_to(w2, (hid_p, proj_p)).astype(jnp.bfloat16)
    b2p = _pad_to(b2, (1, proj_p))
    return w1p, bn, w2p, b2p


def mlp_head_ref(x, w1, b1, gamma, beta, w2, b2):
    h = x @ w1 + b1
    mean = jnp.mean(h, axis=0, keepdims=True)
    var = jnp.mean((h - mean) ** 2, axis=0, keepdims=True)
    h = (h - mean) / jnp.sqrt(var + BN_EPS) * gamma + beta
    h = jnp.maximum(h, 0.0)
    return h @ w2 + b2


# TODO(synk): BatchNorm1d running_mean/running_var buffer updates (training-side
# bookkeeping with no effect on the forward output) are not implemented.

if __name__ == "__main__":
    G, B, IN, HID, PROJ = 4, 8, 32, 64, 16
    key = jax.random.PRNGKey(0)
    kx, kp = jax.random.split(key)
    xg = jax.random.normal(kx, (G, B, IN), jnp.float32)

    raw = init_params(kp, IN, HID, PROJ)         # (w1, b1, gamma, beta, w2, b2)
    packed = pack_params(*raw)                   # (w1p_bf16, bn, w2p_bf16, b2p)

    # Kernel: batched groups (weights resident across the grid) + the
    # single-batch, module-equivalent entry point.
    out_g = jax.block_until_ready(mlp_head_batched(xg, *packed, projection_size=PROJ))
    out_0 = jax.block_until_ready(mlp_head(xg[0], *packed, projection_size=PROJ))
    assert out_g.shape == (G, B, PROJ)
    assert out_0.shape == (B, PROJ)

    # Reference: module semantics in f32, using the same (bf16-stored) weights,
    # including b1 (a provable no-op under training-mode BN).  Tolerance covers
    # the bf16 activation casts feeding the MXU.
    w1p, bn, w2p, b2p = packed
    w1f = w1p.astype(jnp.float32)[:IN, :HID]
    w2f = w2p.astype(jnp.float32)[:HID, :PROJ]
    _, b1, gamma, beta, _, b2 = raw
    ref = jnp.stack([mlp_head_ref(xg[g], w1f, b1, gamma, beta, w2f, b2) for g in range(G)])

    assert jnp.allclose(out_g, ref, atol=2e-2, rtol=2e-2), "batched mismatch vs reference"
    assert jnp.allclose(out_0, ref[0], atol=2e-2, rtol=2e-2), "single-batch mismatch vs reference"
    print("KERNEL_OK")
</pallas_src>

<mosaic_0001>
module attributes {stable_mosaic.version = 11 : i64} {
  func.func @mlp_head_kernel(%arg0: i32, %arg1: memref<1x8x128xf32, #tpu.memory_space<vmem>>, %arg2: memref<128x128xbf16, #tpu.memory_space<vmem>>, %arg3: memref<2x128xf32, #tpu.memory_space<vmem>>, %arg4: memref<128x128xbf16, #tpu.memory_space<vmem>>, %arg5: memref<1x128xf32, #tpu.memory_space<vmem>>, %arg6: memref<1x8x128xf32, #tpu.memory_space<vmem>>) attributes {dimension_semantics = [#tpu.dimension_semantics<parallel>], iteration_bounds = array<i64: 4>, scalar_prefetch = 0 : i64, scratch_operands = 0 : i64, tpu.core_type = #tpu.core_type<tc>, window_params = [{transform_indices = @transform_0, window_bounds = array<i64: 1, 8, 128>}, {pipeline_mode = #tpu.pipeline_mode<synchronous>, transform_indices = @transform_1, window_bounds = array<i64: 128, 128>}, {pipeline_mode = #tpu.pipeline_mode<synchronous>, transform_indices = @transform_2, window_bounds = array<i64: 2, 128>}, {pipeline_mode = #tpu.pipeline_mode<synchronous>, transform_indices = @transform_3, window_bounds = array<i64: 128, 128>}, {pipeline_mode = #tpu.pipeline_mode<synchronous>, transform_indices = @transform_4, window_bounds = array<i64: 1, 128>}, {transform_indices = @transform_5, window_bounds = array<i64: 1, 8, 128>}]} {
    %c0 = arith.constant 0 : index
    %c0_0 = arith.constant 0 : index
    %c0_1 = arith.constant 0 : index
    %0 = vector.load %arg1[%c0, %c0_0, %c0_1] : memref<1x8x128xf32, #tpu.memory_space<vmem>>, vector<1x8x128xf32>
    %1 = vector.shape_cast %0 : vector<1x8x128xf32> to vector<8x128xf32>
    %2 = arith.truncf %1 : vector<8x128xf32> to vector<8x128xbf16>
    %c0_2 = arith.constant 0 : index
    %c0_3 = arith.constant 0 : index
    %3 = vector.load %arg2[%c0_2, %c0_3] : memref<128x128xbf16, #tpu.memory_space<vmem>>, vector<128x128xbf16>
    %cst = arith.constant dense<0.000000e+00> : vector<8x128xf32>
    %4 = tpu.matmul %2, %3, %cst {dimension_numbers = #tpu.dot_dimension_numbers<[1], [0], [0], [1], [0, 0, 1, 1], [], []>} : vector<8x128xbf16>, vector<128x128xbf16>, vector<8x128xf32> -> vector<8x128xf32>
    %cst_4 = arith.constant dense<0.000000e+00> : vector<128xf32>
    %5 = vector.multi_reduction <add>, %4, %cst_4 [0] : vector<8x128xf32> to vector<128xf32>
    %6 = vector.shape_cast %5 : vector<128xf32> to vector<1x128xf32>
    %7 = arith.mulf %4, %4 : vector<8x128xf32>
    %cst_5 = arith.constant dense<0.000000e+00> : vector<128xf32>
    %8 = vector.multi_reduction <add>, %7, %cst_5 [0] : vector<8x128xf32> to vector<128xf32>
    %9 = vector.shape_cast %8 : vector<128xf32> to vector<1x128xf32>
    %cst_6 = arith.constant 1.250000e-01 : f32
    %10 = vector.broadcast %cst_6 : f32 to vector<1x128xf32>
    %11 = arith.mulf %6, %10 : vector<1x128xf32>
    %cst_7 = arith.constant 1.250000e-01 : f32
    %12 = vector.broadcast %cst_7 : f32 to vector<1x128xf32>
    %13 = arith.mulf %9, %12 : vector<1x128xf32>
    %14 = arith.mulf %11, %11 : vector<1x128xf32>
    %15 = arith.subf %13, %14 : vector<1x128xf32>
    %cst_8 = arith.constant 0.000000e+00 : f32
    %16 = vector.broadcast %cst_8 : f32 to vector<1x128xf32>
    %17 = arith.maximumf %15, %16 : vector<1x128xf32>
    %c0_9 = arith.constant 0 : index
    %c0_10 = arith.constant 0 : index
    %18 = vector.load %arg3[%c0_9, %c0_10] : memref<2x128xf32, #tpu.memory_space<vmem>>, vector<2x128xf32>
    %19 = vector.extract_strided_slice %18 {offsets = [0, 0], sizes = [1, 128], strides = [1, 1]} : vector<2x128xf32> to vector<1x128xf32>
    %cst_11 = arith.constant 9.99999974E-6 : f32
    %20 = vector.broadcast %cst_11 : f32 to vector<1x128xf32>
    %21 = arith.addf %17, %20 : vector<1x128xf32>
    %22 = math.rsqrt %21 : vector<1x128xf32>
    %23 = arith.mulf %19, %22 : vector<1x128xf32>
    %24 = vector.extract_strided_slice %18 {offsets = [1, 0], sizes = [1, 128], strides = [1, 1]} : vector<2x128xf32> to vector<1x128xf32>
    %25 = arith.mulf %11, %23 : vector<1x128xf32>
    %26 = arith.subf %24, %25 : vector<1x128xf32>
    %27 = vector.broadcast %23 : vector<1x128xf32> to vector<8x128xf32>
    %28 = arith.mulf %4, %27 : vector<8x128xf32>
    %29 = vector.broadcast %26 : vector<1x128xf32> to vector<8x128xf32>
    %30 = arith.addf %28, %29 : vector<8x128xf32>
    %cst_12 = arith.constant 0.000000e+00 : f32
    %31 = vector.broadcast %cst_12 : f32 to vector<8x128xf32>
    %32 = arith.maximumf %30, %31 : vector<8x128xf32>
    %33 = arith.truncf %32 : vector<8x128xf32> to vector<8x128xbf16>
    %c0_13 = arith.constant 0 : index
    %c0_14 = arith.constant 0 : index
    %34 = vector.load %arg4[%c0_13, %c0_14] : memref<128x128xbf16, #tpu.memory_space<vmem>>, vector<128x128xbf16>
    %cst_15 = arith.constant dense<0.000000e+00> : vector<8x128xf32>
    %35 = tpu.matmul %33, %34, %cst_15 {dimension_numbers = #tpu.dot_dimension_numbers<[1], [0], [0], [1], [0, 0, 1, 1], [], []>} : vector<8x128xbf16>, vector<128x128xbf16>, vector<8x128xf32> -> vector<8x128xf32>
    %c0_16 = arith.constant 0 : index
    %c0_17 = arith.constant 0 : index
    %36 = vector.load %arg5[%c0_16, %c0_17] : memref<1x128xf32, #tpu.memory_space<vmem>>, vector<1x128xf32>
    %37 = vector.broadcast %36 : vector<1x128xf32> to vector<8x128xf32>
    %38 = arith.addf %35, %37 : vector<8x128xf32>
    %c0_18 = arith.constant 0 : index
    %c0_19 = arith.constant 0 : index
    %c0_20 = arith.constant 0 : index
    %39 = vector.load %arg6[%c0_18, %c0_19, %c0_20] : memref<1x8x128xf32, #tpu.memory_space<vmem>>, vector<1x8x128xf32>
    %40 = vector.shape_cast %39 : vector<1x8x128xf32> to vector<8x128xf32>
    %41 = vector.shape_cast %38 : vector<8x128xf32> to vector<1x8x128xf32>
    tpu.vector_store %arg6[%c0_18, %c0_19, %c0_20], %41 {strides = array<i32>} : memref<1x8x128xf32, #tpu.memory_space<vmem>>, vector<1x8x128xf32>,
    return
  }
  func.func @transform_0(%arg0: i32) -> (i32, i32, i32) {
    %c0_i32 = arith.constant 0 : i32
    %c0_i32_0 = arith.constant 0 : i32
    %c0_i32_1 = arith.constant 0 : i32
    return %arg0, %c0_i32, %c0_i32_0 : i32, i32, i32
  }
  func.func @transform_1(%arg0: i32) -> (i32, i32) {
    %c0_i32 = arith.constant 0 : i32
    %c0_i32_0 = arith.constant 0 : i32
    %c0_i32_1 = arith.constant 0 : i32
    return %c0_i32, %c0_i32_0 : i32, i32
  }
  func.func @transform_2(%arg0: i32) -> (i32, i32) {
    %c0_i32 = arith.constant 0 : i32
    %c0_i32_0 = arith.constant 0 : i32
    %c0_i32_1 = arith.constant 0 : i32
    return %c0_i32, %c0_i32_0 : i32, i32
  }
  func.func @transform_3(%arg0: i32) -> (i32, i32) {
    %c0_i32 = arith.constant 0 : i32
    %c0_i32_0 = arith.constant 0 : i32
    %c0_i32_1 = arith.constant 0 : i32
    return %c0_i32, %c0_i32_0 : i32, i32
  }
  func.func @transform_4(%arg0: i32) -> (i32, i32) {
    %c0_i32 = arith.constant 0 : i32
    %c0_i32_0 = arith.constant 0 : i32
    %c0_i32_1 = arith.constant 0 : i32
    return %c0_i32, %c0_i32_0 : i32, i32
  }
  func.func @transform_5(%arg0: i32) -> (i32, i32, i32) {
    %c0_i32 = arith.constant 0 : i32
    %c0_i32_0 = arith.constant 0 : i32
    %c0_i32_1 = arith.constant 0 : i32
    return %arg0, %c0_i32, %c0_i32_0 : i32, i32, i32
  }
}

</mosaic_0001>

<bundles_post_ra>
// kernel: tpu_custom_call.1
= control target key start
LH: loop header
LB: loop body
LE: loop exit
PB: predicated region body
PF: predicated region fallthrough
CT: control target
= control target key end

     0   :  { %10 = vsyncpa [#allocation3], 0  ;;  %s1239_s0 = inlined_call_operand.hbm [shape: f32[4,8,128], index: 0, kind: input, shape index: {}]   ;;  %s1240_s1 = inlined_call_operand.hbm [shape: bf16[128,128], index: 1, kind: input, shape index: {}]   ;;  %s1241_s2 = inlined_call_operand.vmem [shape: f32[2,128], index: 2, kind: input, shape index: {}]   ;;  %s1242_s3 = inlined_call_operand.hbm [shape: bf16[128,128], index: 3, kind: input, shape index: {}]   ;;  %s1243_s4 = inlined_call_operand.vmem [shape: f32[1,128], index: 4, kind: input, shape index: {}]   ;;  %s1244_s5 = inlined_call_operand.hbm [shape: f32[4,8,128], index: 5, kind: output, shape index: {}]  }
   0x1   :  { %12 = vsyncpa [#allocation3 + $0x1], 0 }
   0x2   :  { %13 = vsyncpa [#allocation6], 0 }
   0x3   :  { %14 = vsyncpa [#allocation4], 0 }
   0x4   :  { %16 = vsyncpa [#allocation4 + $0x1], 0  ;;  %s1006_s18 = smov 0   ;;  %s1008_s19 = smov 0  }
   0x5   :  { %s1010_s20 = smov 0   ;;  %s1012_s21 = smov 0  }
   0x6 LB: > { %s1027_s22 = sadd.s32 4294967295, %s966_s21   ;;  %s630_s23 = sadd.s32 4294967294, %s966_s21   ;;  %s966_s21 = sphi %s1012_s21, %s1263_s21   ;;  %s962_s20 = sphi %s1010_s20, %s1262_s20   ;;  %s958_s19 = sphi %s1008_s19, %s1261_s19   ;;  %s954_s18 = sphi %s1006_s18, %s1260_s18  }
   0x7   : > { %p42_p0 = scmp.ne.s32.totalorder %s958_s19, %s954_s18  ;;  %p1245_p1 = scmp.eq.s32.totalorder %s1027_s22, 0 }
   0x8   : > { %p156_p3 = scmp.eq.s32.totalorder %s630_s23, 3  ;;  %p631_p5 = scmp.ge.s32.totalorder %s966_s21, 1 }
   0x9   : > { %p1036_p4 = por %p1245_p1, %p42_p0  ;;  %p163_p7 = scmp.lt.s32.totalorder %s966_s21, 5 }
   0xa   : > { %p1041_p6 = por %p156_p3, %p42_p0  ;;  %s968_s27 = smov [#allocation5]  }
   0xb   : > { %s1248_s24 = scalar_select %p1036_p4, 1, 0 }
   0xc   : > { %s1249_s25 = scalar_select %p1041_p6, 1, 0 }
   0xd   : > { %p1046_p8 = pnand %p631_p5, %p163_p7  ;;  %s175_s28 = sshll.u32 %s968_s27, 4  ;;  %s176_s28 = int_to_ptr.vmem [resolvable:$true] %s175_s28 }
   0xe   : > { %s969_s30 = smov [#allocation7]   ;;  %s810_s9 = scalar_lea.hbm %s1240_s1, 1024 }
   0xf   : > { %s1250_s26 = scalar_select %p1046_p8, 1, 0 }
  0x10   : > { %p733_p9 = pneg %p1046_p8  ;;  %s191_s6 = sshll.u32 %s969_s30, 4  ;;  %s1058_s6 = int_to_ptr.vmem [resolvable:$true] %s191_s6 }
  0x11   : > { %p811_p11 = scmp.ne.s32.totalorder %s1240_s1, %s810_s9  ;;  %p817_p3 = scmp.lt.u32.totalorder %s810_s9, %s1240_s1 }
  0x12   : > { %p1054_p10 = pnand %p733_p9, %p1245_p1 }
  0x14   : > { %p812_p12 = pneg %p1054_p10 }
  0x16   : > { %p813_p13 = pnand %p812_p12, %p811_p11 }
  0x18   : > { %p814_p0 = pneg %p813_p13 }
  0x1a   : > { %p819_p5 = pnand %p817_p3, %p814_p0 }
  0x1c   : > { %822 = shalt.err (!%p819_p5)
}
  0x1d   : > { %s823_s14 = scalar_lea.vmem %s176_s28, 1024  ;;  %p831_p2 = scmp.lt.s32.totalorder %s176_s28, %s176_s28 }
  0x1e   : > { %p824_p7 = scmp.ne.s32.totalorder %s176_s28, %s823_s14  ;;  %p832_p6 = scmp.lt.s32.totalorder %s823_s14, %s823_s14 }
  0x20   : > { %p826_p9 = pnand %p824_p7, %p812_p12  ;;  %p833_p4 = por %p832_p6, %p831_p2 }
  0x22   : > { %p827_p1 = pneg %p826_p9 }
  0x24   : > { %p834_p8 = pnand %p833_p4, %p827_p1 }
  0x26   : > { %837 = shalt.err (!%p834_p8)
}
  0x27   : > { %s970_s15 = smov 64   ;;  %s971_s16 = smov 4  }
  0x28   : > { %736 = dma.hbm_to_vmem [thread:$0]  (!%p1054_p10), %s1240_s1, 1024, %s176_s28, [#allocation6], %s970_s15, %s970_s15, %s971_s16  }
  0x29   : > { %s838_s7 = scalar_lea.hbm %s1242_s3, 1024 }
  0x2a   : > { %p839_p11 = scmp.ne.s32.totalorder %s1242_s3, %s838_s7  ;;  %p845_p4 = scmp.lt.u32.totalorder %s838_s7, %s1242_s3 }
  0x2c   : > { %p841_p1 = pnand %p839_p11, %p812_p12 }
  0x2e   : > { %p842_p2 = pneg %p841_p1 }
  0x30   : > { %p847_p6 = pnand %p845_p4, %p842_p2 }
  0x32   : > { %850 = shalt.err (!%p847_p6)
}
  0x33   : > { %s851_s28 = scalar_lea.vmem %s1058_s6, 1024  ;;  %p859_p3 = scmp.lt.s32.totalorder %s1058_s6, %s1058_s6 }
  0x34   : > { %p852_p8 = scmp.ne.s32.totalorder %s1058_s6, %s851_s28  ;;  %p860_p5 = scmp.lt.s32.totalorder %s851_s28, %s851_s28 }
  0x36   : > { %p854_p13 = pnand %p852_p8, %p812_p12  ;;  %p861_p7 = por %p860_p5, %p859_p3 }
  0x38   : > { %p855_p0 = pneg %p854_p13 }
  0x3a   : > { %p862_p9 = pnand %p861_p7, %p855_p0 }
  0x3c   : > { %865 = shalt.err (!%p862_p9)
}
  0x3d   : > { %739 = dma.hbm_to_vmem [thread:$0]  (!%p1054_p10), %s1242_s3, 1024, %s1058_s6, [#allocation6], %s970_s15, %s970_s15, %s971_s16  }
  0x3e   : > { %s1108_s14 = sadd.s32 1, %s966_s21   ;;  %s29_s29 = sadd.s32 1, %s962_s20 }
  0x3f   : > { %s26_s17 = ssub.s32 %s966_s21, %s1108_s14  ;;  %p36_p12 = scmp.ne.s32.totalorder %s962_s20, %s958_s19 }
  0x40   : > { %p27_p11 = scmp.eq.s32.totalorder %s26_s17, 0  ;;  %p37_p1 = scmp.eq.s32.totalorder %s966_s21, 0 }
  0x41   : > { %p1252_p2 = scmp.eq.s32.totalorder %s1027_s22, 3  ;;  %p750_p6 = scmp.lt.s32.totalorder %s966_s21, 4 }
  0x42   : > { %s1124_s27 = scalar_select %p27_p11, %s962_s20, %s29_s29  }
  0x43   : > { %p1118_p4 = por %p1252_p2, %p36_p12  ;;  %p38_p8 = por %p37_p1, %p36_p12 }
  0x44   : > { %s208_s30 = sand.u32 1, %s962_s20   ;;  %s636_s6 = sshll.u32 %s966_s21, 7 }
  0x45   : > { %s635_s7 = sshll.u32 %s208_s30, 3  ;;  %s1131_s8 = scalar_lea.hbm %s1239_s0, %s636_s6 }
  0x46   : > { %s212_s9 = scalar_lea.vmem [#allocation2], %s635_s7  ;;  %p1135_p10 = pnand %p750_p6, %p38_p8 }
  0x47   : > { %s219_s10 = sshll.u32 %s212_s9, 4  ;;  %s209_s28 = scalar_lea.sflag [#allocation3], %s208_s30  ;;  %s1133_s10 = int_to_ptr.vmem [resolvable:$true] %s219_s10 }
  0x48   : > { %s866_s12 = scalar_lea.hbm %s1131_s8, 128  ;;  %p868_p0 = pneg %p1135_p10 }
  0x49   : > { %p867_p13 = scmp.ne.s32.totalorder %s1131_s8, %s866_s12  ;;  %s871_s17 = scalar_lea.hbm %s1239_s0, 512 }
  0x4a   : > { %p872_p7 = scmp.lt.u32.totalorder %s1131_s8, %s1239_s0  ;;  %p873_p9 = scmp.lt.u32.totalorder %s871_s17, %s866_s12 }
  0x4b   : > { %p869_p3 = pnand %p868_p0, %p867_p13  ;;  %p875_p11 = scmp.lt.u32.totalorder %s866_s12, %s1131_s8 }
  0x4c   : > { %p874_p12 = por %p873_p9, %p872_p7 }
  0x4d   : > { %p870_p5 = pneg %p869_p3 }
  0x4e   : > { %p876_p1 = por %p875_p11, %p874_p12 }
  0x50   : > { %p877_p2 = pnand %p876_p1, %p870_p5 }
  0x52   : > { %880 = shalt.err (!%p877_p2)
}
  0x53   : > { %s881_s30 = scalar_lea.vmem %s1133_s10, 128  ;;  %s972_s15 = smov [#allocation2]  }
  0x54   : > { %p882_p6 = scmp.ne.s32.totalorder %s1133_s10, %s881_s30  ;;  %s886_s16 = sshll.u32 %s972_s15, 4  ;;  %s887_s16 = int_to_ptr.vmem [resolvable:$false] %s886_s16 }
  0x55   : > { %s888_s9 = scalar_lea.vmem %s887_s16, 256  ;;  %p889_p3 = scmp.lt.s32.totalorder %s1133_s10, %s887_s16 }
  0x56   : > { %p884_p8 = pnand %p882_p6, %p868_p0  ;;  %p890_p7 = scmp.lt.s32.totalorder %s888_s9, %s881_s30 }
  0x58   : > { %p885_p13 = pneg %p884_p8  ;;  %p891_p9 = por %p890_p7, %p889_p3 }
  0x5a   : > { %p892_p12 = pnand %p891_p9, %p885_p13 }
  0x5c   : > { %895 = shalt.err (!%p892_p12)
}
  0x5d   : > { %743 = dma.hbm_to_vmem [thread:$0]  (!%p1135_p10), %s1131_s8, 128, %s1133_s10, %s209_s28  }
  0x5e   : > { %p1255_p5 = scmp.ne.s32.totalorder %s1250_s26, 0 }
  0x5f   : > { %s1167_s12 = sand.u32 (!%p1255_p5), 1, %s958_s19   ;;  %p1256_p0 = scmp.ne.s32.totalorder (!%p1255_p5), %s1248_s24, 0 }
  0x60   : > { %228 = sbr.rel (%p1255_p5) target bundleno = 630 (0x276), region = 40  ;;  %s638_s13 = sshll.u32 (!%p1255_p5), %s1167_s12, 3 }
  0x61   : > { %s231_s29 = scalar_lea.sflag (!%p1255_p5), [#allocation3], %s1167_s12  ;;  %s1173_s17 = scalar_lea.vmem (!%p1255_p5), [#allocation2], %s638_s13 }
  0x67   : > { %941 = dma.done.wait (%p1256_p0), %s231_s29, 128  }
  0x68   : > { %943 = vsyncadd (%p1256_p0), %s231_s29, 4294967168  ;;  %p1257_p10 = scmp.eq.s32.totalorder %s1027_s22, 0 }
  0x6a   : > { %945 = dma.done.wait (%p1257_p10), [#allocation6], 2048   ;;  %p1258_p11 = pmov %p1257_p10 }
  0x6b   : > { %v973_v0 = vmov 0.0   ;;  %vm974_vm0 = vmmov 0   ;;  %v792_v1 = vld [vmem:[#allocation5] sm:$0xff]   ;;  %v793_v2 = vld [vmem:[#allocation5 + $0x8] sm:$0xff]   ;;  %v794_v3 = vld [vmem:[#allocation5 + $0x10] sm:$0xff]   ;;  %v403_v42 = vlaneseq  ;;  %s660_s11 = sshll.u32 %s1027_s22, 7 }
  0x6c   : > { %947 = vsyncadd (%p1258_p11), [#allocation6], 4294965248  ;;  %681 = vmatprep.subr.bf16.mxu0 %v973_v0  ;;  %697 = vmatprep.mubr.msk.bf16.mxu0 %vm974_vm0, %v973_v0  ;;  %v795_v4 = vld [vmem:[#allocation5 + $0x18] sm:$0xff]   ;;  %v796_v5 = vld [vmem:[#allocation5 + $0x20] sm:$0xff]   ;;  %s268_s28 = scalar_lea.vmem [#allocation8], %s638_s13  ;;  %s1196_s15 = scalar_lea.hbm %s1244_s5, %s660_s11 }
  0x6d   : > { %701 = vmatprep.subr.bf16.mxu1 %v973_v0  ;;  %717 = vmatprep.mubr.msk.bf16.mxu1 %vm974_vm0, %v973_v0  ;;  %v797_v6 = vld [vmem:[#allocation5 + $0x28] sm:$0xff]   ;;  %v798_v7 = vld [vmem:[#allocation5 + $0x30] sm:$0xff]   ;;  %v799_v8 = vld [vmem:[#allocation5 + $0x38] sm:$0xff]   ;;  %v404_v43 = vshrl.u32 %v403_v42, 7  ;;  %s541_s7 = sshll.u32 %s268_s28, 4  ;;  %s528_s22 = scalar_lea.sflag [#allocation4], %s1167_s12  ;;  %s1198_s7 = int_to_ptr.vmem [resolvable:$true] %s541_s7 }
  0x6e   : > { %682 = vmatpush3.bf16.msra.mxu0 %v792_v1  ;;  %v270_v9 = vld [vmem:[%s1173_s17] sm:$0xff]  ;;  %v800_v11 = vld [vmem:[#allocation7] sm:$0xff]   ;;  %v801_v12 = vld [vmem:[#allocation7 + $0x8] sm:$0xff]   ;;  %s896_s16 = scalar_lea.vmem %s1198_s7, 128  ;;  %s975_s9 = smov [#allocation8]  }
  0x6f   : > { %683 = vmatprep.subr.bf16.mxu0 %v973_v0  ;;  %v271_v10 = vpack.c.bf16 %v270_v9, %v270_v9  ;;  %702 = vmatpush3.bf16.msra.mxu1 %v800_v11  ;;  %v802_v13 = vld [vmem:[#allocation7 + $0x10] sm:$0xff]   ;;  %v803_v14 = vld [vmem:[#allocation7 + $0x18] sm:$0xff]   ;;  %v804_v15 = vld [vmem:[#allocation7 + $0x20] sm:$0xff]   ;;  %v405_v47 = vsub.s32 0, %v404_v43  ;;  %v410_v51 = vsub.s32 1, %v404_v43  ;;  %p897_p1 = scmp.ne.s32.totalorder %s1198_s7, %s896_s16  ;;  %s900_s13 = sshll.u32 %s975_s9, 4  ;;  %s901_s13 = int_to_ptr.vmem [resolvable:$false] %s900_s13 }
  0x70   : > { %703 = vmatprep.subr.bf16.mxu1 %v973_v0  ;;  %v805_v16 = vld [vmem:[#allocation7 + $0x28] sm:$0xff]   ;;  %v806_v17 = vld [vmem:[#allocation7 + $0x30] sm:$0xff]   ;;  %v807_v18 = vld [vmem:[#allocation7 + $0x38] sm:$0xff]   ;;  %s902_s29 = scalar_lea.vmem %s901_s13, 256  ;;  %p903_p8 = scmp.lt.s32.totalorder %s1198_s7, %s901_s13 }
  0x71   : > { %v394_v44 = vld [vmem:[%s1241_s2] sm:$0x3]  ;;  %p898_p2 = pnand %p897_p1, %p1118_p4  ;;  %p904_p13 = scmp.lt.s32.totalorder %s902_s29, %s896_s16 }
  0x72   : > { %684 = vmatpush3.bf16.msra.mxu0 %v793_v2  ;;  %v650_v58 = vld [vmem:[%s1243_s4] ss:$0 sm:$0xff] }
  0x73   : > { %685 = vmatprep.subr.bf16.mxu0 %v973_v0  ;;  %704 = vmatpush3.bf16.msra.mxu1 %v801_v12  ;;  %p899_p6 = pneg %p898_p2  ;;  %p905_p3 = por %p904_p13, %p903_p8 }
  0x74   : > { %705 = vmatprep.subr.bf16.mxu1 %v973_v0 }
  0x75   : > { %p906_p7 = pnand %p905_p3, %p899_p6 }
  0x76   : > { %686 = vmatpush3.bf16.msra.mxu0 %v794_v3 }
  0x77   : > { %687 = vmatprep.subr.bf16.mxu0 %v973_v0  ;;  %706 = vmatpush3.bf16.msra.mxu1 %v802_v13 }
  0x78   : > { %707 = vmatprep.subr.bf16.mxu1 %v973_v0 }
  0x7a   : > { %688 = vmatpush3.bf16.msra.mxu0 %v795_v4 }
  0x7b   : > { %689 = vmatprep.subr.bf16.mxu0 %v973_v0  ;;  %708 = vmatpush3.bf16.msra.mxu1 %v803_v14 }
  0x7c   : > { %709 = vmatprep.subr.bf16.mxu1 %v973_v0 }
  0x7e   : > { %690 = vmatpush3.bf16.msra.mxu0 %v796_v5 }
  0x7f   : > { %691 = vmatprep.subr.bf16.mxu0 %v973_v0  ;;  %710 = vmatpush3.bf16.msra.mxu1 %v804_v15 }
  0x80   : > { %711 = vmatprep.subr.bf16.mxu1 %v973_v0 }
  0x82   : > { %692 = vmatpush3.bf16.msra.mxu0 %v797_v6 }
  0x83   : > { %693 = vmatprep.subr.bf16.mxu0 %v973_v0  ;;  %712 = vmatpush3.bf16.msra.mxu1 %v805_v16 }
  0x84   : > { %713 = vmatprep.subr.bf16.mxu1 %v973_v0 }
  0x86   : > { %694 = vmatpush3.bf16.msra.mxu0 %v798_v7 }
  0x87   : > { %695 = vmatprep.subr.bf16.mxu0 %v973_v0  ;;  %714 = vmatpush3.bf16.msra.mxu1 %v806_v17 }
  0x88   : > { %715 = vmatprep.subr.bf16.mxu1 %v973_v0 }
  0x8a   : > { %696 = vmatpush3.bf16.msra.mxu0 %v799_v8 }
  0x8b   : > { %716 = vmatpush3.bf16.msra.mxu1 %v807_v18 }
  0x8d   : > { %698 = vmatmul.mubr.bf16.vlgmr.msra.gmra.mrb[0].mxu0 %v271_v10 }
 0x160   : > { %v370_v19 = vpop.f32.mrb[0].mxu0 }
 0x161   : > { %v376_v20 = vrot.slane %v370_v19, 4  ;;  %v382_v21 = vmul.f32 %v370_v19, %v370_v19  ;;  %v699_v22 = vpop.f32.mrb[1].mxu0 }
 0x162   : > { %v373_v23 = vpop.f32.mrb[2].mxu0 }
 0x163   : > { %v377_v24 = vadd.f32 %v376_v20, %v370_v19  ;;  %v383_v25 = vrot.slane %v382_v21, 4  ;;  %v700_v26 = vpop.f32.mrb[3].mxu0 }
 0x165   : > { %v378_v27 = vrot.slane %v377_v24, 2  ;;  %v384_v28 = vadd.f32 %v383_v25, %v382_v21 }
 0x167   : > { %v379_v29 = vadd.f32 %v378_v27, %v377_v24  ;;  %v385_v30 = vrot.slane %v384_v28, 2 }
 0x169   : > { %v380_v31 = vrot.slane %v379_v29, 1  ;;  %v386_v32 = vadd.f32 %v385_v30, %v384_v28 }
 0x16b   : > { %v381_v33 = vadd.f32 %v380_v31, %v379_v29  ;;  %v387_v34 = vrot.slane %v386_v32, 1 }
 0x16d   : > { %v388_v35 = vadd.f32 %v387_v34, %v386_v32  ;;  %v389_v36 = vmul.f32 0.125, %v381_v33 }
 0x16f   : > { %v390_v37 = vmul.f32 0.125, %v388_v35  ;;  %v391_v38 = vmul.f32 %v389_v36, %v389_v36 }
 0x171   : > { %v392_v39 = vsub.f32 %v390_v37, %v391_v38 }
 0x173   : > { %v393_v40 = vmax.f32 %v392_v39, 0.0 }
 0x175   : > { %v395_v41 = vadd.f32 1e-05, %v393_v40 }
 0x177   : > { %808 = vrsqrt.f32 %v395_v41 }
 0x181   : > { %v809_v45 = vpop.eup %808 }
 0x182   : > { %v397_v46 = vmul.f32 %v809_v45, %v394_v44 }
 0x184   : > { %v398_v48 = vmul.f32 %v397_v46, %v389_v36  ;;  %v406_v49 = vrot.slane %v397_v46, %v405_v47 }
 0x186   : > { %v400_v50 = vrot.slane %v398_v48, 7  ;;  %v407_v53 = vmul.f32 %v406_v49, %v370_v19 }
 0x188   : > { %v402_v52 = vsub.f32 %v394_v44, %v400_v50 }
 0x18a   : > { %v411_v54 = vrot.slane %v402_v52, %v410_v51 }
 0x18c   : > { %v412_v55 = vadd.f32 %v411_v54, %v407_v53 }
 0x18e   : > { %v413_v56 = vmax.f32 %v412_v55, 0.0 }
 0x190   : > { %v414_v57 = vpack.c.bf16 %v413_v56, %v413_v56 }
 0x192   : > { %718 = vmatmul.mubr.bf16.vlgmr.msra.gmra.mrb[0].mxu1 %v414_v57 }
 0x265   : > { %v520_v59 = vpop.f32.mrb[0].mxu1 }
 0x266   : > { %v521_v60 = vadd.f32 %v650_v58, %v520_v59  ;;  %v719_v61 = vpop.f32.mrb[1].mxu1 }
 0x267   : > { %v523_v62 = vpop.f32.mrb[2].mxu1 }
 0x268   : > { %526 = vst [vmem:[%s268_s28] sm:$0xff] %v521_v60  ;;  %v720_v63 = vpop.f32.mrb[3].mxu1 }
 0x269   : > { %909 = shalt.err (!%p906_p7)
}
 0x26a   : > { %s910_s12 = scalar_lea.hbm %s1196_s15, 128  ;;  %s914_s26 = scalar_lea.hbm %s1244_s5, 512 }
 0x26b   : > { %p911_p9 = scmp.ne.s32.totalorder %s1196_s15, %s910_s12  ;;  %p915_p0 = scmp.lt.u32.totalorder %s1196_s15, %s1244_s5 }
 0x26c   : > { %p916_p10 = scmp.lt.u32.totalorder %s914_s26, %s910_s12  ;;  %p918_p1 = scmp.lt.u32.totalorder %s910_s12, %s1196_s15 }
 0x26d   : > { %p912_p12 = pnand %p911_p9, %p1118_p4 }
 0x26e   : > { %p917_p11 = por %p916_p10, %p915_p0 }
 0x26f   : > { %p913_p5 = pneg %p912_p12 }
 0x270   : > { %p919_p2 = por %p918_p1, %p917_p11 }
 0x272   : > { %p920_p6 = pnand %p919_p2, %p913_p5 }
 0x274   : > { %923 = shalt.err (!%p920_p6)
}
 0x275   : > { %731 = dma.vmem_to_hbm [thread:$0]  (%p1118_p4), %s1198_s7, 128, %s1196_s15, %s528_s22  }
 0x276 PF: > { %p753_p8 = scmp.ge.s32.totalorder %s966_s21, 2  ;;  %s553_s11 = sand.u32 1, %s954_s18  }
 0x277   : > { %p1259_p13 = scmp.ne.s32.totalorder %s1249_s25, 0  ;;  %s554_s28 = scalar_lea.sflag [#allocation4], %s553_s11 }
 0x279   : > { %p745_p3 = pnand %p753_p8, %p1259_p13 }
 0x27b   : > { %949 = dma.done.wait (!%p745_p3), %s554_s28, 128  }
 0x27c   : > { %951 = vsyncadd (!%p745_p3), %s554_s28, 4294967168  ;;  %p19_p7 = scmp.ge.s32.totalorder %s1108_s14, 6   ;;  %s1260_s18 = smov %s958_s19 }
 0x27d   : > { %s1261_s19 = smov %s962_s20  ;;  %s1262_s20 = smov %s1124_s27 }
 0x27e   : > { %s1263_s21 = smov %s1108_s14  ;;  %21 = sbr.rel (!%p19_p7) target bundleno = 6 (0x6), region = 93 }
 0x285   :  { %559 = vsyncpa [#allocation3], 1 }
 0x286   :  { %561 = vsyncpa [#allocation3 + $0x1], 1 }
 0x287   :  { %562 = vsyncpa [#allocation6], 1 }
 0x288   :  { %563 = vsyncpa [#allocation4], 1 }
 0x289   :  { %565 = vsyncpa [#allocation4 + $0x1], 1 }

</bundles_post_ra>
